<compile_context>
chip_gen: v6e
topology: v6e:2x2x1
jax: 0.10.0
libtpu: 0.0.40
codegen_flags: <defaults>
</compile_context>

<pallas_src>
import jax
import jax.numpy as jnp
from jax.experimental import pallas as pl
from jax.experimental.pallas import tpu as pltpu


def _abs_kernel(x_ref, o_ref):
    # Elementwise |x| on the whole VMEM tile (VPU; nowhere near a bottleneck).
    o_ref[...] = jnp.abs(x_ref[...])


_LANE_CANDIDATES = (4096, 2048, 1024, 512, 256, 128)
_TARGET_BLOCK_BYTES = 2 * 1024 * 1024   # ~2 MiB per block (~85% of HBM roofline)
_SMALL_BYTES = 1 * 1024 * 1024          # below this: single block, no grid


def _single_block_abs(x: jax.Array) -> jax.Array:
    # Whole array as one VMEM block; no grid, no per-step overhead.
    return pl.pallas_call(
        _abs_kernel,
        out_shape=jax.ShapeDtypeStruct(x.shape, x.dtype),
    )(x)


def abs_pallas(x: jax.Array) -> jax.Array:
    """Elementwise abs via a Pallas TPU kernel. Matches torch.abs(input)."""
    if x.size == 0:
        return x

    orig_shape = x.shape
    dtype = x.dtype
    n = x.size
    itemsize = jnp.dtype(dtype).itemsize
    total_bytes = n * itemsize

    # --- Sizes not divisible by 128 (rare for conv shapes) ---------------
    if n % 128 != 0:
        if total_bytes <= 8 * 1024 * 1024:
            return _single_block_abs(x)  # fits comfortably in VMEM as one block
        # TODO(synk): add a masked-tail 1D-grid path for large non-128-multiple sizes.
        return jnp.abs(x)

    # --- Tiny tensors: single-block path, reshaped to a lane-dense slab ---
    if total_bytes <= _SMALL_BYTES:
        y = _single_block_abs(jnp.reshape(x, (n // 128, 128)))
        return jnp.reshape(y, orig_shape)

    # --- Large, 128-aligned: lane-dense 2D tiling with big blocks ---------
    lane = next(L for L in _LANE_CANDIDATES if n % L == 0)
    rows = n // lane
    x2d = jnp.reshape(x, (rows, lane))  # no padding, no data copy

    # Block rows sized for ~2 MiB blocks; keep sublane dim a multiple of the
    # packed-dtype tile (8 for f32, 16 for bf16, 32 for int8).
    sublane = max(8, 32 // itemsize)
    target_rows = max(sublane, _TARGET_BLOCK_BYTES // (lane * itemsize))
    tile_rows = min(rows, target_rows)
    tile_rows = max(sublane, (tile_rows // sublane) * sublane)

    grid = (pl.cdiv(rows, tile_rows),)  # ragged last block handled by Pallas

    out2d = pl.pallas_call(
        _abs_kernel,
        out_shape=jax.ShapeDtypeStruct((rows, lane), dtype),
        grid_spec=pltpu.PrefetchScalarGridSpec(
            num_scalar_prefetch=0,
            grid=grid,
            in_specs=[pl.BlockSpec((tile_rows, lane), lambda i: (i, 0))],
            out_specs=pl.BlockSpec((tile_rows, lane), lambda i: (i, 0)),
        ),
        compiler_params=pltpu.CompilerParams(
            dimension_semantics=("parallel",),
        ),
        cost_estimate=pl.CostEstimate(
            flops=0, transcendentals=0, bytes_accessed=2 * total_bytes
        ),
    )(x2d)

    return jnp.reshape(out2d, orig_shape)


if __name__ == "__main__":
    key = jax.random.PRNGKey(0)
    k1, k2, k3 = jax.random.split(key, 3)

    # Tiny NCHW input (module's typical use) -> single-block path.
    x_small = jax.random.normal(k1, (2, 4, 16, 16), dtype=jnp.float32)
    # Larger NCHW input -> tiled lane-dense path, evenly dividing grid.
    x_big = jax.random.normal(k2, (8, 16, 64, 128), dtype=jnp.float32)
    # Row count not a multiple of the tile -> ragged last block path.
    x_ragged = jax.random.normal(k3, (2, 17, 128, 128), dtype=jnp.float32)

    for x in (x_small, x_big, x_ragged):
        y = abs_pallas(x)
        jax.block_until_ready(y)
        assert y.shape == x.shape and y.dtype == x.dtype
        assert jnp.allclose(y, jnp.abs(x))

    print("KERNEL_OK")
</pallas_src>

<mosaic_0001>
module attributes {stable_mosaic.version = 11 : i64} {
  func.func @_abs_kernel(%arg0: memref<16x128xf32, #tpu.memory_space<vmem>>, %arg1: memref<16x128xf32, #tpu.memory_space<vmem>>) attributes {dimension_semantics = [], scalar_prefetch = 0 : i64, scratch_operands = 0 : i64, tpu.core_type = #tpu.core_type<tc>} {
    %c0 = arith.constant 0 : index
    %c0_0 = arith.constant 0 : index
    %0 = vector.load %arg0[%c0, %c0_0] : memref<16x128xf32, #tpu.memory_space<vmem>>, vector<16x128xf32>
    %1 = math.absf %0 : vector<16x128xf32>
    %c0_1 = arith.constant 0 : index
    %c0_2 = arith.constant 0 : index
    %2 = vector.load %arg1[%c0_1, %c0_2] : memref<16x128xf32, #tpu.memory_space<vmem>>, vector<16x128xf32>
    tpu.vector_store %arg1[%c0_1, %c0_2], %1 {strides = array<i32>} : memref<16x128xf32, #tpu.memory_space<vmem>>, vector<16x128xf32>,
    return
  }
}

</mosaic_0001>

<bundles_post_ra>
// kernel: tpu_custom_call.1
= control target key start
LH: loop header
LB: loop body
LE: loop exit
PB: predicated region body
PF: predicated region fallthrough
CT: control target
= control target key end

     0   :  { %6 = vsyncpa [#allocation3], 0  ;;  %s114_s0 = inlined_call_operand.hbm [shape: f32[16,128], index: 0, kind: input, shape index: {}]   ;;  %s115_s1 = inlined_call_operand.hbm [shape: f32[16,128], index: 1, kind: output, shape index: {}]  }
   0x1   :  { %7 = vsyncpa [#allocation4], 0  ;;  %s94_s6 = smov [#allocation2]  }
   0x2   :  { %s13_s7 = sshll.u32 %s94_s6, 4  ;;  %s14_s7 = int_to_ptr.vmem [resolvable:$true] %s13_s7 }
   0x3   :  { %s58_s8 = scalar_lea.vmem %s14_s7, 256  ;;  %p63_p1 = scmp.lt.s32.totalorder %s14_s7, %s14_s7 }
   0x4   :  { %p59_p0 = scmp.ne.s32.totalorder %s14_s7, %s58_s8  ;;  %p64_p2 = scmp.lt.s32.totalorder %s58_s8, %s58_s8 }
   0x6   :  { %p65_p3 = por %p64_p2, %p63_p1 }
   0x8   :  { %p66_p4 = pnand %p65_p3, %p59_p0 }
   0xa   :  { %69 = shalt.err (!%p66_p4)
}
   0xb   :  { %s95_s9 = smov 128   ;;  %s96_s10 = smov 8  }
   0xc   :  { %19 = dma.hbm_to_vmem [thread:$0]  %s114_s0, 256, %s14_s7, [#allocation3], %s95_s9, %s95_s9, %s96_s10  }
   0xd   :  { %90 = dma.done.wait [#allocation3], 256  }
   0xe   :  { %91 = vsyncadd [#allocation3], 4294967040  ;;  %s97_s13 = smov [#allocation5]   ;;  %v23_v0 = vld [vmem:[#allocation2] sm:$0xff]  ;;  %v24_v1 = vld [vmem:[#allocation2 + $0x8] sm:$0xff] }
   0xf   :  { %s34_s14 = sshll.u32 %s97_s13, 4  ;;  %v25_v2 = vand.u32 2147483647, %v23_v0  ;;  %v26_v3 = vand.u32 2147483647, %v24_v1  ;;  %s35_s14 = int_to_ptr.vmem [resolvable:$true] %s34_s14 }
  0x10   :  { %s70_s15 = scalar_lea.vmem %s35_s14, 256  ;;  %p75_p6 = scmp.lt.s32.totalorder %s35_s14, %s35_s14 }
  0x11   :  { %27 = vst [vmem:[#allocation5] sm:$0xff] %v25_v2  ;;  %28 = vst [vmem:[#allocation5 + $0x8] sm:$0xff] %v26_v3  ;;  %p71_p5 = scmp.ne.s32.totalorder %s35_s14, %s70_s15  ;;  %p76_p7 = scmp.lt.s32.totalorder %s70_s15, %s70_s15 }
  0x13   :  { %p77_p8 = por %p76_p7, %p75_p6 }
  0x15   :  { %p78_p9 = pnand %p77_p8, %p71_p5 }
  0x17   :  { %81 = shalt.err (!%p78_p9)
}
  0x18   :  { %40 = dma.vmem_to_hbm [thread:$0]  %s35_s14, 256, %s115_s1, [#allocation4], %s95_s9, %s95_s9, %s96_s10  }
  0x19   :  { %92 = dma.done.wait [#allocation4], 256  }
  0x1a   :  { %93 = vsyncadd [#allocation4], 4294967040 }
  0x1b   :  { %44 = vsyncpa [#allocation3], 1 }
  0x1c   :  { %45 = vsyncpa [#allocation4], 1 }

</bundles_post_ra>
